<compile_context>
chip_gen: v7x
topology: tpu7x:2x2x1
jax: 0.10.0
libtpu: 0.0.40
codegen_flags: <defaults>
</compile_context>

<pallas_src>
import math

import jax
import jax.numpy as jnp
import numpy as np
from jax.experimental import pallas as pl
from jax.experimental.pallas import tpu as pltpu


# ---------------------------------------------------------------------------
# Pallas kernel: one (row-tile, batch) block per grid step.
# ---------------------------------------------------------------------------
def adapter_kernel(img_ref, w_ref, pos_bias_ref, t_row_ref, o_ref):
    # img_ref:      (TILE_R, R*C)   lane-packed image pixels of this block
    # w_ref:        (R*C, R*O=128)  block-diagonal image projection weight
    # pos_bias_ref: (TILE_R, 128)   pos_feats @ W_pos + bias (batch-invariant)
    # t_row_ref:    (1, 128)        (2t-1) * W_t, lane-tiled, this batch element
    # o_ref:        (TILE_R, 128)   lane-dense packed output block
    #
    # Precision note: no explicit precision= on the dot; Mosaic's default f32
    # MXU path is used and is validated to 1e-5 against a Precision.HIGHEST
    # reference (K = R*C = 16 with only C = 4 non-zero terms per output, so
    # accumulation error does not grow with the packing).
    acc = jnp.dot(img_ref[...], w_ref[...], preferred_element_type=jnp.float32)
    # Single broadcast add + ONE fused lane-dense store per block.
    o_ref[...] = acc + pos_bias_ref[...] + t_row_ref[...]


# ---------------------------------------------------------------------------
# Parameter / buffer construction (deterministic, mirrors __init__).
# ---------------------------------------------------------------------------
def make_pos_feats(input_shape, n_freq_bands):
    H, W = input_shape
    x = jnp.linspace(-1.0, 1.0, H)
    y = jnp.linspace(-1.0, 1.0, W)
    x_pos, y_pos = jnp.meshgrid(x, y, indexing="ij")
    pos = jnp.stack((x_pos, y_pos), axis=-1).reshape(-1, 2)           # (HW, 2)
    x_bands = jnp.linspace(1.0, H / 2, n_freq_bands)
    y_bands = jnp.linspace(1.0, W / 2, n_freq_bands)
    bands = jnp.stack((x_bands, y_bands), axis=0)                     # (2, nF)
    vals = pos[:, :, None] * bands[None, :, :]                        # (HW, 2, nF)
    vals = math.pi * vals.reshape(vals.shape[0], -1)                  # (HW, 2nF)
    pos_feats = jnp.concatenate([jnp.sin(vals), jnp.cos(vals)], axis=-1)
    pos_feats = jnp.concatenate([pos_feats, pos], axis=-1)            # (HW, 4nF+2)
    return pos_feats.astype(jnp.float32)


def _pick_row_tile(rpb, target=512):
    """Largest packed-row tile <= target that divides rpb (multiple of 8 unless full)."""
    if rpb <= target:
        return rpb
    for tile in range(target, 7, -1):
        if rpb % tile == 0 and tile % 8 == 0:
            return tile
    return rpb


# ---------------------------------------------------------------------------
# Init-time, parameter-only precompute (hoisted out of the per-call path).
# ---------------------------------------------------------------------------
def prepare_adapter_operands(pos_feats, w, b, input_channels):
    """Returns (w2, pos_bias2, wt_row) with lane packing factor R = 128 // O.

    w2        (R*C, R*O)  block-diagonal image-projection weight
    pos_bias2 (HW/R, R*O) lane-packed  pos_feats @ W_pos + bias
    wt_row    (1, R*O)    lane-tiled   W_t row
    """
    C = input_channels
    HW, P = pos_feats.shape
    F, O = w.shape
    assert F == C + 1 + P, "weight height must be C + 1(mask) + pos_feat_height"
    assert O <= 128 and 128 % O == 0, "output_height must divide 128 for lane packing"
    R = 128 // O
    assert HW % R == 0, "H*W must be a multiple of the lane packing factor"

    # Concat order in the module is [img | t | pos]; slice the Linear weight.
    w_img = w[:C, :]
    w_t = w[C:C + 1, :]
    w_pos = w[C + 1:, :]

    # Batch-invariant pos contribution + bias.
    pos_bias = jnp.dot(pos_feats, w_pos,
                       precision=jax.lax.Precision.HIGHEST) + b[None, :]   # (HW, O)
    pos_bias2 = pos_bias.reshape(HW // R, R * O)                           # (HW/R, 128)

    # Block-diagonal weight: ONE lane-aligned matmul covers R packed pixels.
    w2 = jnp.kron(jnp.eye(R, dtype=w.dtype), w_img)                        # (R*C, 128)
    wt_row = jnp.tile(w_t, (1, R))                                         # (1, 128)
    return w2, pos_bias2, wt_row


# ---------------------------------------------------------------------------
# Per-call forward: lane packing (free reshapes) + tiled pallas_call.
# ---------------------------------------------------------------------------
@jax.jit
def fourier_image_input_adapter(img, t, w2, pos_bias2, wt_row):
    """img: (B, H, W, C) NHWC; t: (B, 1, 1); operands from prepare_adapter_operands.

    Returns (B, H*W, output_height) float32.
    """
    B, H, W_, C = img.shape
    HW = H * W_
    RC, RO = w2.shape
    R = RC // C
    O = RO // R
    rpb = HW // R                      # packed rows per batch element
    assert pos_bias2.shape == (rpb, RO)

    TILE_R = _pick_row_tile(rpb)       # ~512 packed rows per block (review target)
    n_row_tiles = rpb // TILE_R

    # Pure row-major (free) reshape: R consecutive pixels per 128-wide packed row.
    img2 = img.reshape(B, rpb, RC)
    # Per-call, per-batch t contribution folded into a single lane-tiled row.
    t_rows = (2.0 * t.reshape(B, 1, 1).astype(jnp.float32) - 1.0) * wt_row[None]

    out_packed = pl.pallas_call(
        adapter_kernel,
        out_shape=jax.ShapeDtypeStruct((B, rpb, RO), jnp.float32),
        grid_spec=pltpu.PrefetchScalarGridSpec(
            num_scalar_prefetch=0,
            # Batch is the INNER axis so the pos_bias block (index ignores b)
            # is fetched once per row tile and reused across the batch.
            grid=(n_row_tiles, B),
            in_specs=[
                # Streamed image block for this (row-tile, batch) step.
                pl.BlockSpec((None, TILE_R, RC), lambda r, b: (b, r, 0)),
                # Constant index -> fetched once, VMEM-resident for the whole grid.
                pl.BlockSpec((RC, RO), lambda r, b: (0, 0)),
                # Changes only with the row tile -> reused across the inner batch axis.
                pl.BlockSpec((TILE_R, RO), lambda r, b: (r, 0)),
                # Tiny per-batch (1, 128) row.
                pl.BlockSpec((None, 1, RO), lambda r, b: (b, 0, 0)),
            ],
            out_specs=pl.BlockSpec((None, TILE_R, RO), lambda r, b: (b, r, 0)),
        ),
        compiler_params=pltpu.CompilerParams(
            # Both axes are independent -> shardable across v7x's two TensorCores.
            dimension_semantics=("parallel", "parallel")),
    )(img2, w2, pos_bias2, t_rows)

    # Packed (B, HW/R, 128) -> (B, HW, O): row-major-compatible (free) reshape.
    return out_packed.reshape(B, HW, O)


# ---------------------------------------------------------------------------
# Pure-JAX reference (literal transcription of the PyTorch forward).
# ---------------------------------------------------------------------------
def reference(img, t, pos_feats, w, b):
    B, H, W_, C = img.shape
    HW = H * W_
    flat_img = img.reshape(B, HW, C)
    t_feats = jnp.broadcast_to(t.astype(jnp.float32), (B, HW, 1)) * 2.0 - 1.0
    fourier_feats = jnp.broadcast_to(pos_feats[None],
                                     (B, HW, pos_feats.shape[-1]))
    all_feats = jnp.concatenate([flat_img, t_feats, fourier_feats], axis=-1)
    return jnp.matmul(all_feats, w, precision=jax.lax.Precision.HIGHEST) + b


if __name__ == "__main__":
    # Small shapes consistent with the module.
    B = 2
    C = 4                 # input_channels
    H = W = 16            # input_shape
    n_freq_bands = 8
    output_height = 32

    pos_feats = make_pos_feats((H, W), n_freq_bands)       # (256, 34)
    P = pos_feats.shape[-1]
    F = C + 1 + P                                          # 39 (img + mask + pos)

    key = jax.random.PRNGKey(0)
    k_img, k_t, k_w, k_b = jax.random.split(key, 4)
    img = jax.random.normal(k_img, (B, H, W, C), dtype=jnp.float32)
    t = jax.random.uniform(k_t, (B, 1, 1), dtype=jnp.float32)
    # Deterministic Linear(F, output_height) params (synthetic init).
    lim = 1.0 / math.sqrt(F)
    w = jax.random.uniform(k_w, (F, output_height), dtype=jnp.float32,
                           minval=-lim, maxval=lim)
    b = jax.random.uniform(k_b, (output_height,), dtype=jnp.float32,
                           minval=-lim, maxval=lim)

    # Parameter-only precompute: done ONCE at init, not per forward call.
    w2, pos_bias2, wt_row = prepare_adapter_operands(pos_feats, w, b, C)

    out = fourier_image_input_adapter(img, t, w2, pos_bias2, wt_row)
    out = jax.block_until_ready(out)

    ref = reference(img, t, pos_feats, w, b)
    np.testing.assert_allclose(np.asarray(out), np.asarray(ref),
                               rtol=1e-5, atol=1e-5)
    print("KERNEL_OK")
</pallas_src>

<mosaic_0001>
module attributes {stable_mosaic.version = 11 : i64} {
  func.func @adapter_kernel(%arg0: i32, %arg1: i32, %arg2: memref<1x64x16xf32, #tpu.memory_space<vmem>>, %arg3: memref<16x128xf32, #tpu.memory_space<vmem>>, %arg4: memref<64x128xf32, #tpu.memory_space<vmem>>, %arg5: memref<1x1x128xf32, #tpu.memory_space<vmem>>, %arg6: memref<1x64x128xf32, #tpu.memory_space<vmem>>) attributes {dimension_semantics = [#tpu.dimension_semantics<parallel>, #tpu.dimension_semantics<parallel>], iteration_bounds = array<i64: 1, 2>, scalar_prefetch = 0 : i64, scratch_operands = 0 : i64, tpu.core_type = #tpu.core_type<tc>, window_params = [{transform_indices = @transform_0, window_bounds = array<i64: 1, 64, 16>}, {pipeline_mode = #tpu.pipeline_mode<synchronous>, transform_indices = @transform_1, window_bounds = array<i64: 16, 128>}, {transform_indices = @transform_2, window_bounds = array<i64: 64, 128>}, {transform_indices = @transform_3, window_bounds = array<i64: 1, 1, 128>}, {transform_indices = @transform_4, window_bounds = array<i64: 1, 64, 128>}]} {
    %c0 = arith.constant 0 : index
    %c0_0 = arith.constant 0 : index
    %c0_1 = arith.constant 0 : index
    %0 = vector.load %arg2[%c0, %c0_0, %c0_1] : memref<1x64x16xf32, #tpu.memory_space<vmem>>, vector<1x64x16xf32>
    %1 = vector.shape_cast %0 : vector<1x64x16xf32> to vector<64x16xf32>
    %c0_2 = arith.constant 0 : index
    %c0_3 = arith.constant 0 : index
    %2 = vector.load %arg3[%c0_2, %c0_3] : memref<16x128xf32, #tpu.memory_space<vmem>>, vector<16x128xf32>
    %cst = arith.constant dense<0.000000e+00> : vector<64x128xf32>
    %3 = tpu.matmul %1, %2, %cst {dimension_numbers = #tpu.dot_dimension_numbers<[1], [0], [0], [1], [0, 0, 1, 1], [], []>} : vector<64x16xf32>, vector<16x128xf32>, vector<64x128xf32> -> vector<64x128xf32>
    %c0_4 = arith.constant 0 : index
    %c0_5 = arith.constant 0 : index
    %4 = vector.load %arg4[%c0_4, %c0_5] : memref<64x128xf32, #tpu.memory_space<vmem>>, vector<64x128xf32>
    %5 = arith.addf %3, %4 : vector<64x128xf32>
    %c0_6 = arith.constant 0 : index
    %c0_7 = arith.constant 0 : index
    %c0_8 = arith.constant 0 : index
    %6 = vector.load %arg5[%c0_6, %c0_7, %c0_8] : memref<1x1x128xf32, #tpu.memory_space<vmem>>, vector<1x1x128xf32>
    %7 = vector.shape_cast %6 : vector<1x1x128xf32> to vector<1x128xf32>
    %8 = vector.broadcast %7 : vector<1x128xf32> to vector<64x128xf32>
    %9 = arith.addf %5, %8 : vector<64x128xf32>
    %c0_9 = arith.constant 0 : index
    %c0_10 = arith.constant 0 : index
    %c0_11 = arith.constant 0 : index
    %10 = vector.load %arg6[%c0_9, %c0_10, %c0_11] : memref<1x64x128xf32, #tpu.memory_space<vmem>>, vector<1x64x128xf32>
    %11 = vector.shape_cast %10 : vector<1x64x128xf32> to vector<64x128xf32>
    %12 = vector.shape_cast %9 : vector<64x128xf32> to vector<1x64x128xf32>
    tpu.vector_store %arg6[%c0_9, %c0_10, %c0_11], %12 {strides = array<i32>} : memref<1x64x128xf32, #tpu.memory_space<vmem>>, vector<1x64x128xf32>,
    return
  }
  func.func @transform_0(%arg0: i32, %arg1: i32) -> (i32, i32, i32) {
    %c0_i32 = arith.constant 0 : i32
    %c0_i32_0 = arith.constant 0 : i32
    return %arg1, %arg0, %c0_i32 : i32, i32, i32
  }
  func.func @transform_1(%arg0: i32, %arg1: i32) -> (i32, i32) {
    %c0_i32 = arith.constant 0 : i32
    %c0_i32_0 = arith.constant 0 : i32
    %c0_i32_1 = arith.constant 0 : i32
    return %c0_i32, %c0_i32_0 : i32, i32
  }
  func.func @transform_2(%arg0: i32, %arg1: i32) -> (i32, i32) {
    %c0_i32 = arith.constant 0 : i32
    %c0_i32_0 = arith.constant 0 : i32
    return %arg0, %c0_i32 : i32, i32
  }
  func.func @transform_3(%arg0: i32, %arg1: i32) -> (i32, i32, i32) {
    %c0_i32 = arith.constant 0 : i32
    %c0_i32_0 = arith.constant 0 : i32
    %c0_i32_1 = arith.constant 0 : i32
    return %arg1, %c0_i32, %c0_i32_0 : i32, i32, i32
  }
  func.func @transform_4(%arg0: i32, %arg1: i32) -> (i32, i32, i32) {
    %c0_i32 = arith.constant 0 : i32
    %c0_i32_0 = arith.constant 0 : i32
    return %arg1, %arg0, %c0_i32 : i32, i32, i32
  }
}

</mosaic_0001>

<bundles_post_ra>
// kernel: fourier_image_input_adapter.1
= control target key start
LH: loop header
LB: loop body
LE: loop exit
PB: predicated region body
PF: predicated region fallthrough
CT: control target
= control target key end

     0   :  { %s683_s15 = smov 0   ;;  %s685_s16 = smov 0   ;;  %s765_s0 = inlined_call_operand.vmem [shape: f32[2,64,16], index: 0, kind: input, shape index: {}]   ;;  %s766_s1 = inlined_call_operand.vmem [shape: f32[16,128], index: 1, kind: input, shape index: {}]   ;;  %s767_s2 = inlined_call_operand.vmem [shape: f32[64,128], index: 2, kind: input, shape index: {}]   ;;  %s768_s3 = inlined_call_operand.vmem [shape: f32[2,1,128], index: 3, kind: input, shape index: {}]   ;;  %s769_s4 = inlined_call_operand.vmem [shape: f32[2,64,128], index: 4, kind: output, shape index: {}]  }
   0x1   :  { %s687_s17 = smov 0  }
   0x2 LB: > { %s23_s18 = sadd.s32 1, %s652_s16  ;;  %p560_p0 = scmp.ge.s32.totalorder %s656_s17, 1  ;;  %s656_s17 = sphi %s687_s17, %s14_s17   ;;  %s652_s16 = sphi %s685_s16, %s771_s16   ;;  %s648_s15 = sphi %s683_s15, %s770_s15  }
   0x3   : > { %p24_p1 = scmp.ge.s32.totalorder %s23_s18, 2  ;;  %p202_p2 = scmp.lt.s32.totalorder %s656_s17, 3 }
   0x5   : > { %s773_s18 = smov (%p24_p1, %s23_s18), 0  ;;  %p203_p3 = pnand %p560_p0, %p202_p2 }
   0x6   : > { %v281_v0 = vld [vmem:[%s766_s1] sm:$0xff] (!%p203_p3)  ;;  %v282_v1 = vld [vmem:[%s766_s1 + $0x8] sm:$0xff] (!%p203_p3)  ;;  %p245_p4 = scmp.lt.s32.totalorder (!%p203_p3), %s648_s15, 1  ;;  %vm291_vm0 = vcmask (!%p203_p3), 130048   ;;  %v286_v24 = vld [vmem:[%s767_s2 + $0x18] sm:$0xff] (!%p203_p3) }
   0x7   : > { %206 = sbr.rel (%p203_p3) target bundleno = 242 (0xf2), region = 36  ;;  %v604_v2 = vpack.c.bf16 (!%p203_p3), %v282_v1, %v281_v0  ;;  %v284_v11 = vld [vmem:[%s767_s2 + $0x8] sm:$0xff] (!%p203_p3)  ;;  %v283_v13 = vld [vmem:[%s767_s2] sm:$0xff] (!%p203_p3)  ;;  %v290_v25 = vld [vmem:[%s767_s2 + $0x38] sm:$0xff] (!%p203_p3) }
   0x8   : > { %v288_v12 = vld [vmem:[%s767_s2 + $0x28] sm:$0xff] (!%p203_p3)  ;;  %v287_v14 = vld [vmem:[%s767_s2 + $0x20] sm:$0xff] (!%p203_p3)  ;;  %v285_v28 = vld [vmem:[%s767_s2 + $0x10] sm:$0xff] (!%p203_p3) }
   0x9   : > { %605 = vmatprep.subr.bf16.mxu0 (!%p203_p3), %v604_v2  ;;  %608 = vmatprep.subr.bf16.mxu1 (!%p203_p3), %v604_v2  ;;  %v289_v29 = vld [vmem:[%s767_s2 + $0x30] sm:$0xff] (!%p203_p3) }
   0xa   : > { %607 = vmatpush3.bf16.msra.mxu0 (!%p203_p3), %v604_v2  ;;  %609 = vmatpush3.bf16.msra.mxu1 (!%p203_p3), %v604_v2 }
   0xe   : > { %s775_s15 = smov (!%p245_p4, %s648_s15), 1 }
   0xf   : > { %s576_s23 = sshll.u32 %s775_s15, 6  ;;  %s262_s29 = scalar_lea.vmem %s768_s3, %s775_s15 }
  0x10   : > { %s252_s26 = scalar_lea.vmem %s765_s0, %s576_s23  ;;  %v573_v16 = vld [vmem:[%s262_s29] ss:$0 sm:$0xff]  ;;  %s271_s14 = scalar_lea.vmem %s769_s4, %s576_s23 }
  0x11   : > { %v273_v3 = vld [vmem:[%s252_s26] sm:$0xff]  ;;  %v274_v5 = vld [vmem:[%s252_s26 + $0x8] sm:$0xff]  ;;  %v275_v7 = vld [vmem:[%s252_s26 + $0x10] sm:$0xff] }
  0x12   : > { %v277_v4 = vld [vmem:[%s252_s26 + $0x20] sm:$0xff]  ;;  %592 = vmatprep.mubr.msk.f32.mxu0 %vm291_vm0, %v273_v3  ;;  %v278_v6 = vld [vmem:[%s252_s26 + $0x28] sm:$0xff]  ;;  %v279_v8 = vld [vmem:[%s252_s26 + $0x30] sm:$0xff] }
  0x13   : > { %598 = vmatprep.mubr.msk.f32.mxu1 %vm291_vm0, %v277_v4  ;;  %593 = vmatmul.mubr.msk.f32.vlgmr.msra.gmra.mrb[0].mxu0 %vm291_vm0, %v274_v5  ;;  %v276_v9 = vld [vmem:[%s252_s26 + $0x18] sm:$0xff] }
  0x14   : > { %599 = vmatmul.mubr.msk.f32.vlgmr.msra.gmra.mrb[0].mxu1 %vm291_vm0, %v278_v6  ;;  %595 = vmatprep.mubr.msk.f32.mxu0 %vm291_vm0, %v275_v7  ;;  %v280_v10 = vld [vmem:[%s252_s26 + $0x38] sm:$0xff] }
  0x15   : > { %601 = vmatprep.mubr.msk.f32.mxu1 %vm291_vm0, %v279_v8 }
  0x17   : > { %596 = vmatmul.mubr.msk.f32.gmra.mrb[2].mxu0 %vm291_vm0, %v276_v9 }
  0x18   : > { %602 = vmatmul.mubr.msk.f32.gmra.mrb[2].mxu1 %vm291_vm0, %v280_v10 }
  0xe6   : > { %v594_v15 = vpop.f32.mrb[0].mxu0 }
  0xe7   : > { %v600_v17 = vpop.f32.mrb[0].mxu1  ;;  %v388_v18 = vadd.f32 %v594_v15, %v284_v11  ;;  %v382_v20 = vpop.f32.mrb[1].mxu0 }
  0xe8   : > { %v408_v19 = vadd.f32 %v600_v17, %v288_v12  ;;  %v402_v21 = vpop.f32.mrb[1].mxu1  ;;  %v383_v22 = vadd.f32 %v382_v20, %v283_v13 }
  0xe9   : > { %v403_v23 = vadd.f32 %v402_v21, %v287_v14  ;;  %v429_v26 = vadd.f32 %v573_v16, %v388_v18 }
  0xea   : > { %v433_v27 = vadd.f32 %v573_v16, %v408_v19  ;;  %v428_v30 = vadd.f32 %v573_v16, %v383_v22  ;;  %v597_v32 = vpop.f32.mrb[2].mxu0 }
  0xeb   : > { %v432_v31 = vadd.f32 %v573_v16, %v403_v23  ;;  %v603_v33 = vpop.f32.mrb[2].mxu1  ;;  %437 = vst [vmem:[%s271_s14 + $0x8] sm:$0xff] %v429_v26  ;;  %v398_v34 = vadd.f32 %v597_v32, %v286_v24  ;;  %v392_v36 = vpop.f32.mrb[3].mxu0 }
  0xec   : > { %441 = vst [vmem:[%s271_s14 + $0x28] sm:$0xff] %v433_v27  ;;  %v418_v35 = vadd.f32 %v603_v33, %v290_v25  ;;  %v412_v37 = vpop.f32.mrb[3].mxu1  ;;  %436 = vst [vmem:[%s271_s14] sm:$0xff] %v428_v30  ;;  %v393_v38 = vadd.f32 %v392_v36, %v285_v28 }
  0xed   : > { %440 = vst [vmem:[%s271_s14 + $0x20] sm:$0xff] %v432_v31  ;;  %v413_v39 = vadd.f32 %v412_v37, %v289_v29  ;;  %v431_v40 = vadd.f32 %v573_v16, %v398_v34 }
  0xee   : > { %v435_v41 = vadd.f32 %v573_v16, %v418_v35  ;;  %v430_v42 = vadd.f32 %v573_v16, %v393_v38 }
  0xef   : > { %v434_v43 = vadd.f32 %v573_v16, %v413_v39  ;;  %439 = vst [vmem:[%s271_s14 + $0x18] sm:$0xff] %v431_v40 }
  0xf0   : > { %443 = vst [vmem:[%s271_s14 + $0x38] sm:$0xff] %v435_v41  ;;  %438 = vst [vmem:[%s271_s14 + $0x10] sm:$0xff] %v430_v42 }
  0xf1   : > { %442 = vst [vmem:[%s271_s14 + $0x30] sm:$0xff] %v434_v43 }
  0xf2 PF: > { %s14_s17 = sadd.s32 1, %s656_s17   ;;  %s770_s15 = smov %s652_s16 }
  0xf3   : > { %p11_p5 = scmp.ge.s32.totalorder %s14_s17, 4   ;;  %s771_s16 = smov %s773_s18 }
  0xf5   :  { %13 = sbr.rel (!%p11_p5) target bundleno = 2 (0x2), region = 72 }

</bundles_post_ra>
